<compile_context>
chip_gen: v7x
topology: tpu7x:2x2x1
jax: 0.10.0
libtpu: 0.0.40
codegen_flags: <defaults>
</compile_context>

<pallas_src>
import math

import numpy as np
import jax
import jax.numpy as jnp
from jax.experimental import pallas as pl
from jax.experimental.pallas import tpu as pltpu


# --------------------- host-side constant builders (built once per configuration) ---------------------

def adaptive_pool_matrix(in_size: int, out_size: int) -> np.ndarray:
    """P[b, h] such that P @ v is adaptive average pooling along one axis (PyTorch rule)."""
    P = np.zeros((out_size, in_size), dtype=np.float32)
    for i in range(out_size):
        start = (i * in_size) // out_size
        end = -((-(i + 1) * in_size) // out_size)  # ceil((i+1)*in/out)
        P[i, start:end] = 1.0 / float(end - start)
    return P


def bilinear_upsample_matrix(out_size: int, in_size: int) -> np.ndarray:
    """U[o, i] for 1-D bilinear interpolation with align_corners=True."""
    U = np.zeros((out_size, in_size), dtype=np.float32)
    if in_size == 1:
        U[:, 0] = 1.0
        return U
    for o in range(out_size):
        src = o * (in_size - 1) / (out_size - 1) if out_size > 1 else 0.0
        i0 = min(max(int(np.floor(src)), 0), in_size - 1)
        i1 = min(i0 + 1, in_size - 1)
        frac = src - i0
        U[o, i0] += 1.0 - frac
        U[o, i1] += frac
    return U


def _round_up(v: int, m: int) -> int:
    return ((v + m - 1) // m) * m


def make_ppm_plan(H: int, W: int, bins, reduction_dim: int):
    """Fused pool / upsample / mask constants, lane-padded (HWpad & BBpad multiples of 128)."""
    HW = H * W
    HWpad = _round_up(HW, 128)
    poolTs, upTs = [], []
    for b in bins:
        Ph = adaptive_pool_matrix(H, b)
        Pw = adaptive_pool_matrix(W, b)
        Uh = bilinear_upsample_matrix(H, b)
        Uw = bilinear_upsample_matrix(W, b)
        poolTs.append(np.kron(Ph, Pw).T)   # (HW, b*b)
        upTs.append(np.kron(Uh, Uw).T)     # (b*b, HW)
    poolT = np.concatenate(poolTs, axis=1)   # (HW, BBtot)
    upT = np.concatenate(upTs, axis=0)       # (BBtot, HW)
    BBtot = poolT.shape[1]
    BBpad = _round_up(BBtot, 128)

    R = reduction_dim
    nbR = len(bins) * R

    # Block-diagonal mask: branch i occupies rows [i*R,(i+1)*R) and its own b*b columns.
    # Zero in the lane-padding columns -> padded activations are exactly 0.
    mask = np.zeros((nbR, BBpad), dtype=np.float32)
    off = 0
    for i, b in enumerate(bins):
        bb = b * b
        mask[i * R:(i + 1) * R, off:off + bb] = 1.0
        off += bb

    poolT_p = np.zeros((HWpad, BBpad), np.float32)
    poolT_p[:HW, :BBtot] = poolT
    upT_p = np.zeros((BBpad, HWpad), np.float32)
    upT_p[:BBtot, :HW] = upT

    return {
        "H": H, "W": W, "bins": tuple(bins), "R": R,
        "HW": HW, "HWpad": HWpad, "BBtot": BBtot, "BBpad": BBpad,
        "poolT": jnp.asarray(poolT_p),   # (HWpad, BBpad)
        "upT": jnp.asarray(upT_p),       # (BBpad, HWpad)
        "mask": jnp.asarray(mask),       # (nb*R, BBpad)
    }


def fold_params(params):
    """Fold BN scale into the 1x1 conv weight; stack all branches.

    params: list of (wc (R,C), bn_scale (R,), bn_bias (R,)) per bin.
    Returns w_fold (nb*R, C), b_fold (nb*R,).
    """
    ws, bs = [], []
    for wc, scale, bias in params:
        ws.append(scale[:, None] * wc)
        bs.append(bias)
    return jnp.concatenate(ws, axis=0), jnp.concatenate(bs, axis=0)


# ----------------------------- VMEM budget / tile helpers -----------------------------

def _auto_vmem_limit() -> int:
    """Generation-aware scoped-VMEM limit: ~12 MiB headroom below physical VMEM
    (v7x: ~52 of 64 MiB; v5e/v6e: capped at 112 of 128 MiB)."""
    cap = None
    try:
        cap = getattr(pltpu.get_tpu_info(), "vmem_capacity_bytes", None)
    except Exception:
        cap = None
    if not cap:
        return 48 * 1024 * 1024
    return int(max(min(cap - 12 * (1 << 20), 112 * (1 << 20)), 16 * (1 << 20)))


def _pick_hw_tile(HWpad: int, per_lane_bytes: int, fixed_bytes: int,
                  vmem_limit_bytes: int, cap: int = 2048) -> int:
    """Largest multiple-of-128 HW tile dividing HWpad that fits the VMEM budget
    (double-buffered block sizes already folded into per_lane_bytes / fixed_bytes)."""
    budget = int(vmem_limit_bytes * 0.75)
    best, t = 128, 128
    limit = min(cap, HWpad)
    while t <= limit:
        if HWpad % t == 0 and fixed_bytes + per_lane_bytes * t <= budget:
            best = t
        t += 128
    return best


# ----------------------------------- Pallas kernels -----------------------------------

def _pool_conv_body(x_ref, poolT_ref, w_ref, b_ref, mask_ref, a_ref, pooled_acc):
    # Grid: (N, nHW).  x_ref: (1, C, thw) in x's original dtype; poolT_ref: (thw, BBpad);
    # w_ref: (nb*R, C) with BN scale folded; b_ref: (nb*R, 1) f32; mask_ref: (nb*R, BBpad);
    # a_ref (out): (1, nb*R, BBpad) f32; pooled_acc (scratch): (C, BBpad) f32.
    j = pl.program_id(1)

    @pl.when(j == 0)
    def _():
        pooled_acc[...] = jnp.zeros_like(pooled_acc)

    # Adaptive average pooling for ALL bins as one matmul over this HW tile.
    # The x tile is cast to the compute dtype in-kernel (VPU); accumulation is f32.
    pooled_acc[...] += jnp.dot(x_ref[0].astype(poolT_ref.dtype), poolT_ref[...],
                               preferred_element_type=jnp.float32)

    @pl.when(j == pl.num_programs(1) - 1)
    def _():
        # 1x1 conv (BN scale folded in) + bias + ReLU; the block-diagonal mask keeps only
        # each branch's own pooled columns (and zeroes the lane-padding columns).
        # NOTE: the f32 accumulator is cast to the compute dtype for the conv matmul
        # (exact for f32; ~1e-3 relative error on the bf16 path -- documented trade-off).
        pooled = pooled_acc[...].astype(w_ref.dtype)
        z = jnp.dot(w_ref[...], pooled, preferred_element_type=jnp.float32)
        a_ref[0] = jnp.maximum(z + b_ref[...], 0.0) * mask_ref[...]


def _pool_conv_kernel(x_ref, poolT_ref, w_ref, b_ref, mask_ref, a_ref, pooled_acc):
    _pool_conv_body(x_ref, poolT_ref, w_ref, b_ref, mask_ref, a_ref, pooled_acc)


def _pool_conv_passthrough_kernel(x_ref, poolT_ref, w_ref, b_ref, mask_ref,
                                  a_ref, outx_ref, pooled_acc):
    # Write the x passthrough channels of the final output while x is already in VMEM,
    # so stage 2 never has to re-read x from HBM.  x precision is preserved exactly.
    outx_ref[0] = x_ref[0].astype(outx_ref.dtype)
    _pool_conv_body(x_ref, poolT_ref, w_ref, b_ref, mask_ref, a_ref, pooled_acc)


def _upsample_slab_kernel(a_ref, upT_ref, outin_ref, o_ref):
    # Grid: (N, nHW, nC).  a_ref: (1, cb, BBpad) f32; upT_ref: (BBpad, thw);
    # outin_ref: the stage-1 output (x passthrough already written), aliased to this
    # call's output and never touched here; o_ref: (1, cb, thw) branch-channel slab.
    del outin_ref
    y = jnp.dot(a_ref[0].astype(upT_ref.dtype), upT_ref[...],
                preferred_element_type=jnp.float32)
    o_ref[0] = y.astype(o_ref.dtype)


def _upsample_concat_kernel(x_ref, a_ref, upT_ref, o_ref):
    # Fallback path (channel slabs not 8-aligned): x is re-read and written through with
    # slice stores (no in-kernel concatenate temporary).
    C = x_ref.shape[1]
    y = jnp.dot(a_ref[0].astype(upT_ref.dtype), upT_ref[...],
                preferred_element_type=jnp.float32)
    o_ref[0, :C, :] = x_ref[0].astype(o_ref.dtype)
    o_ref[0, C:, :] = y.astype(o_ref.dtype)


# --------------------------------- PPM forward wrapper ---------------------------------

def ppm_forward(x, w_fold, b_fold, plan, *, compute_dtype=jnp.float32, out_dtype=None,
                hw_tile_pool=None, hw_tile_up=None, vmem_limit_bytes=None,
                fuse_passthrough=None):
    """x: (N, C, H, W) NCHW.  Returns (N, C + len(bins)*R, H, W) in out_dtype (default x.dtype).

    compute_dtype: matmul operand dtype.  bf16 is recommended on v5e as well as v6e/v7x.
    The x passthrough channels are always copied at x's own precision.
    """
    N, C, H, W = x.shape
    assert (H, W) == (plan["H"], plan["W"]), "plan was built for a different spatial size"
    HW, HWpad, BBpad = plan["HW"], plan["HWpad"], plan["BBpad"]
    nbR = w_fold.shape[0]
    assert plan["mask"].shape[0] == nbR, "plan reduction_dim/bins do not match w_fold"
    Ctot = C + nbR
    cdt = jnp.dtype(compute_dtype)
    odt = jnp.dtype(out_dtype) if out_dtype is not None else x.dtype

    cbch = math.gcd(C, nbR)
    if fuse_passthrough is None:
        fuse_passthrough = (cbch % 8 == 0)   # channel slabs sublane-aligned
    if fuse_passthrough:
        assert C % 8 == 0 and cbch % 8 == 0, "fused passthrough needs 8-aligned channel slabs"

    if vmem_limit_bytes is None:
        vmem_limit_bytes = _auto_vmem_limit()

    # x is streamed in its original dtype (no wrapper-side astype pass over HBM).
    x_flat = x.reshape(N, C, HW)
    if HWpad != HW:
        # TODO(synk): push the HW zero-padding into the kernels (ragged last tile) to avoid
        # this extra pad/slice pass over x and the output for non-128-multiple feature maps.
        x_flat = jnp.pad(x_flat, ((0, 0), (0, 0), (0, HWpad - HW)))

    poolT = plan["poolT"].astype(cdt)
    upT = plan["upT"].astype(cdt)
    mask = plan["mask"]
    w = w_fold.astype(cdt)
    b = b_fold.reshape(nbR, 1).astype(jnp.float32)

    xb, cdtb, ob = x.dtype.itemsize, cdt.itemsize, odt.itemsize

    # ---- stage 1: pooling (HW-tiled reduction) + folded conv + bias + ReLU (+ passthrough) ----
    per_lane1 = 2 * (C * xb + BBpad * cdtb) + (2 * C * ob if fuse_passthrough else 0)
    fixed1 = (2 * nbR * C * cdtb + 2 * nbR * BBpad * 4          # w, mask (double-buffered)
              + 2 * nbR * BBpad * 4 + C * BBpad * 4 + 2 * nbR * 4)  # a out, scratch, bias
    thw1 = hw_tile_pool or _pick_hw_tile(HWpad, per_lane1, fixed1, vmem_limit_bytes)
    assert HWpad % thw1 == 0 and thw1 % 128 == 0
    nhw1 = HWpad // thw1

    s1_in_specs = [
        pl.BlockSpec((1, C, thw1), lambda n, j: (n, 0, j)),   # x tile (original dtype)
        pl.BlockSpec((thw1, BBpad), lambda n, j: (j, 0)),     # fused pooling matrix tile
        pl.BlockSpec((nbR, C), lambda n, j: (0, 0)),          # folded conv weight
        pl.BlockSpec((nbR, 1), lambda n, j: (0, 0)),          # folded BN bias
        pl.BlockSpec((nbR, BBpad), lambda n, j: (0, 0)),      # block-diagonal mask
    ]
    a_spec = pl.BlockSpec((1, nbR, BBpad), lambda n, j: (n, 0, 0))
    s1_params = pltpu.CompilerParams(
        dimension_semantics=("parallel", "arbitrary"),
        vmem_limit_bytes=vmem_limit_bytes)

    if fuse_passthrough:
        a, out1 = pl.pallas_call(
            _pool_conv_passthrough_kernel,
            out_shape=(jax.ShapeDtypeStruct((N, nbR, BBpad), jnp.float32),
                       jax.ShapeDtypeStruct((N, Ctot, HWpad), odt)),
            grid=(N, nhw1),
            in_specs=s1_in_specs,
            out_specs=(a_spec,
                       pl.BlockSpec((1, C, thw1), lambda n, j: (n, 0, j))),
            scratch_shapes=[pltpu.VMEM((C, BBpad), jnp.float32)],
            compiler_params=s1_params,
        )(x_flat, poolT, w, b, mask)
    else:
        a = pl.pallas_call(
            _pool_conv_kernel,
            out_shape=jax.ShapeDtypeStruct((N, nbR, BBpad), jnp.float32),
            grid=(N, nhw1),
            in_specs=s1_in_specs,
            out_specs=a_spec,
            scratch_shapes=[pltpu.VMEM((C, BBpad), jnp.float32)],
            compiler_params=s1_params,
        )(x_flat, poolT, w, b, mask)

    # ---- stage 2: bilinear (align_corners=True) upsample of all branches in one matmul ----
    if fuse_passthrough:
        nc = nbR // cbch
        per_lane2 = 2 * (BBpad * cdtb + cbch * ob)
        fixed2 = 2 * cbch * BBpad * 4
        thw2 = hw_tile_up or _pick_hw_tile(HWpad, per_lane2, fixed2, vmem_limit_bytes)
        assert HWpad % thw2 == 0 and thw2 % 128 == 0
        nhw2 = HWpad // thw2
        c_off = C // cbch
        out = pl.pallas_call(
            _upsample_slab_kernel,
            out_shape=jax.ShapeDtypeStruct((N, Ctot, HWpad), odt),
            grid=(N, nhw2, nc),
            in_specs=[
                pl.BlockSpec((1, cbch, BBpad), lambda n, j, c: (n, c, 0)),   # activations
                pl.BlockSpec((BBpad, thw2), lambda n, j, c: (0, j)),         # fused upsample matrix
                pl.BlockSpec(memory_space=pl.ANY),                           # aliased stage-1 output
            ],
            out_specs=pl.BlockSpec((1, cbch, thw2),
                                   lambda n, j, c: (n, c_off + c, j)),
            input_output_aliases={2: 0},
            compiler_params=pltpu.CompilerParams(
                dimension_semantics=("parallel", "parallel", "parallel"),
                vmem_limit_bytes=vmem_limit_bytes),
        )(a, upT, out1)
    else:
        per_lane2 = 2 * (C * xb + BBpad * cdtb + Ctot * ob)
        fixed2 = 2 * nbR * BBpad * 4
        thw2 = hw_tile_up or _pick_hw_tile(HWpad, per_lane2, fixed2, vmem_limit_bytes)
        assert HWpad % thw2 == 0 and thw2 % 128 == 0
        nhw2 = HWpad // thw2
        out = pl.pallas_call(
            _upsample_concat_kernel,
            out_shape=jax.ShapeDtypeStruct((N, Ctot, HWpad), odt),
            grid=(N, nhw2),
            in_specs=[
                pl.BlockSpec((1, C, thw2), lambda n, j: (n, 0, j)),
                pl.BlockSpec((1, nbR, BBpad), lambda n, j: (n, 0, 0)),
                pl.BlockSpec((BBpad, thw2), lambda n, j: (0, j)),
            ],
            out_specs=pl.BlockSpec((1, Ctot, thw2), lambda n, j: (n, 0, j)),
            compiler_params=pltpu.CompilerParams(
                dimension_semantics=("parallel", "parallel"),
                vmem_limit_bytes=vmem_limit_bytes),
        )(x_flat, a, upT)

    if HWpad != HW:
        out = out[:, :, :HW]
    return out.reshape(N, Ctot, H, W)


# ------------------------------ parameters & pure-JAX reference ------------------------------

def make_ppm_params(key, in_dim, reduction_dim, bins, eps=1e-5):
    """Deterministic per-branch params: (conv_weight (R,C), bn_scale (R,), bn_bias (R,))."""
    params = []
    for i, _ in enumerate(bins):
        k = jax.random.fold_in(key, i)
        k_w, k_g, k_b, k_m, k_v = jax.random.split(k, 5)
        wc = 0.1 * jax.random.normal(k_w, (reduction_dim, in_dim), dtype=jnp.float32)
        gamma = jax.random.uniform(k_g, (reduction_dim,), jnp.float32, 0.5, 1.5)
        beta = 0.1 * jax.random.normal(k_b, (reduction_dim,), dtype=jnp.float32)
        run_mean = 0.1 * jax.random.normal(k_m, (reduction_dim,), dtype=jnp.float32)
        run_var = jax.random.uniform(k_v, (reduction_dim,), jnp.float32, 0.5, 1.5)
        scale = gamma / jnp.sqrt(run_var + eps)
        bias = beta - run_mean * scale
        params.append((wc, scale, bias))
    return params


def ppm_reference(x, params, bins):
    """Pure-JAX reference (unfused, unfolded) using the same separable pool/upsample math."""
    N, C, H, W = x.shape
    outs = [x]
    for (wc, scale, bias), b in zip(params, bins):
        Ph = jnp.asarray(adaptive_pool_matrix(H, b))
        Pw = jnp.asarray(adaptive_pool_matrix(W, b))
        Uh = jnp.asarray(bilinear_upsample_matrix(H, b))
        Uw = jnp.asarray(bilinear_upsample_matrix(W, b))
        pooled = jnp.einsum('bh,nchw,dw->ncbd', Ph, x, Pw)
        z = jnp.einsum('rc,ncbd->nrbd', wc, pooled)
        a = jnp.maximum(z * scale[None, :, None, None] + bias[None, :, None, None], 0.0)
        y = jnp.einsum('hb,nrbd,wd->nrhw', Uh, a, Uw)
        outs.append(y)
    return jnp.concatenate(outs, axis=1)


if __name__ == "__main__":
    key = jax.random.PRNGKey(0)
    k_x, k_p = jax.random.split(key)

    bins = (1, 2, 3, 6)

    # --- fused-passthrough path (8-aligned channel slabs) ---
    N, C, H, W = 2, 16, 16, 16
    R = 4
    x = jax.random.normal(k_x, (N, C, H, W), dtype=jnp.float32)
    params = make_ppm_params(k_p, C, R, bins)
    plan = make_ppm_plan(H, W, bins, R)          # built once, reused across calls
    w_fold, b_fold = fold_params(params)         # BN scale folded into the 1x1 conv
    ref = ppm_reference(x, params, bins)
    Ctot = C + len(bins) * R

    # f32 path, 2 HW tiles -> exercises the tiled pooling reduction and the aliased write.
    out = jax.block_until_ready(
        ppm_forward(x, w_fold, b_fold, plan, compute_dtype=jnp.float32,
                    hw_tile_pool=128, hw_tile_up=128))
    assert out.shape == (N, Ctot, H, W), out.shape
    np.testing.assert_allclose(np.asarray(out), np.asarray(ref), rtol=1e-4, atol=1e-4)

    # bf16 matmul path (f32 accumulation); x passthrough channels stay bit-exact f32.
    out_bf = jax.block_until_ready(
        ppm_forward(x, w_fold, b_fold, plan, compute_dtype=jnp.bfloat16))
    np.testing.assert_array_equal(np.asarray(out_bf[:, :C]), np.asarray(x))
    np.testing.assert_allclose(np.asarray(out_bf), np.asarray(ref), rtol=5e-2, atol=5e-2)

    # --- non-8-aligned channels -> unfused fallback path (x re-read in stage 2) ---
    C2, R2 = 4, 2
    x2 = jax.random.normal(jax.random.fold_in(k_x, 1), (N, C2, H, W), dtype=jnp.float32)
    params2 = make_ppm_params(jax.random.fold_in(k_p, 1), C2, R2, bins)
    plan2 = make_ppm_plan(H, W, bins, R2)
    w2, b2 = fold_params(params2)
    out2 = jax.block_until_ready(ppm_forward(x2, w2, b2, plan2, compute_dtype=jnp.float32))
    np.testing.assert_allclose(np.asarray(out2),
                               np.asarray(ppm_reference(x2, params2, bins)),
                               rtol=1e-4, atol=1e-4)

    # --- HW not a multiple of 128 -> lane padding handled by the plan/wrapper ---
    H3 = W3 = 10
    x3 = jax.random.normal(jax.random.fold_in(k_x, 2), (N, C, H3, W3), dtype=jnp.float32)
    plan3 = make_ppm_plan(H3, W3, bins, R)
    out3 = jax.block_until_ready(ppm_forward(x3, w_fold, b_fold, plan3))
    np.testing.assert_allclose(np.asarray(out3),
                               np.asarray(ppm_reference(x3, params, bins)),
                               rtol=1e-4, atol=1e-4)

    print("KERNEL_OK")
</pallas_src>

<mosaic_0001>
module attributes {stable_mosaic.version = 11 : i64} {
  func.func @_pool_conv_passthrough_kernel(%arg0: i32, %arg1: i32, %arg2: memref<1x16x128xf32, #tpu.memory_space<vmem>>, %arg3: memref<128x128xf32, #tpu.memory_space<vmem>>, %arg4: memref<16x16xf32, #tpu.memory_space<vmem>>, %arg5: memref<16x1xf32, #tpu.memory_space<vmem>>, %arg6: memref<16x128xf32, #tpu.memory_space<vmem>>, %arg7: memref<1x16x128xf32, #tpu.memory_space<vmem>>, %arg8: memref<1x16x128xf32, #tpu.memory_space<vmem>>, %arg9: memref<16x128xf32, #tpu.memory_space<vmem>>) attributes {dimension_semantics = [#tpu.dimension_semantics<parallel>, #tpu.dimension_semantics<arbitrary>], iteration_bounds = array<i64: 2, 2>, scalar_prefetch = 0 : i64, scratch_operands = 1 : i64, tpu.core_type = #tpu.core_type<tc>, window_params = [{transform_indices = @transform_0, window_bounds = array<i64: 1, 16, 128>}, {transform_indices = @transform_1, window_bounds = array<i64: 128, 128>}, {pipeline_mode = #tpu.pipeline_mode<synchronous>, transform_indices = @transform_2, window_bounds = array<i64: 16, 16>}, {pipeline_mode = #tpu.pipeline_mode<synchronous>, transform_indices = @transform_3, window_bounds = array<i64: 16, 1>}, {pipeline_mode = #tpu.pipeline_mode<synchronous>, transform_indices = @transform_4, window_bounds = array<i64: 16, 128>}, {transform_indices = @transform_5, window_bounds = array<i64: 1, 16, 128>}, {transform_indices = @transform_6, window_bounds = array<i64: 1, 16, 128>}]} {
    %c0 = arith.constant 0 : index
    %c0_0 = arith.constant 0 : index
    %c0_1 = arith.constant 0 : index
    %0 = vector.load %arg2[%c0, %c0_0, %c0_1] : memref<1x16x128xf32, #tpu.memory_space<vmem>>, vector<1x16x128xf32>
    %1 = vector.shape_cast %0 : vector<1x16x128xf32> to vector<16x128xf32>
    %c0_2 = arith.constant 0 : index
    %c0_3 = arith.constant 0 : index
    %c0_4 = arith.constant 0 : index
    %2 = vector.load %arg8[%c0_2, %c0_3, %c0_4] : memref<1x16x128xf32, #tpu.memory_space<vmem>>, vector<1x16x128xf32>
    %3 = vector.shape_cast %2 : vector<1x16x128xf32> to vector<16x128xf32>
    %4 = vector.shape_cast %1 : vector<16x128xf32> to vector<1x16x128xf32>
    tpu.vector_store %arg8[%c0_2, %c0_3, %c0_4], %4 {strides = array<i32>} : memref<1x16x128xf32, #tpu.memory_space<vmem>>, vector<1x16x128xf32>,
    %c0_i32 = arith.constant 0 : i32
    %5 = arith.cmpi eq, %arg1, %c0_i32 : i32
    %6 = arith.extui %5 : i1 to i32
    %c0_i32_5 = arith.constant 0 : i32
    %7 = arith.cmpi ne, %6, %c0_i32_5 : i32
    scf.if %7 {
      %cst_16 = arith.constant 0.000000e+00 : f32
      %18 = vector.broadcast %cst_16 : f32 to vector<16x128xf32>
      %c0_17 = arith.constant 0 : index
      %c0_18 = arith.constant 0 : index
      %19 = vector.load %arg9[%c0_17, %c0_18] : memref<16x128xf32, #tpu.memory_space<vmem>>, vector<16x128xf32>
      tpu.vector_store %arg9[%c0_17, %c0_18], %18 {strides = array<i32>} : memref<16x128xf32, #tpu.memory_space<vmem>>, vector<16x128xf32>,
    } else {
    }
    %c0_6 = arith.constant 0 : index
    %c0_7 = arith.constant 0 : index
    %8 = vector.load %arg9[%c0_6, %c0_7] : memref<16x128xf32, #tpu.memory_space<vmem>>, vector<16x128xf32>
    %c0_8 = arith.constant 0 : index
    %c0_9 = arith.constant 0 : index
    %c0_10 = arith.constant 0 : index
    %9 = vector.load %arg2[%c0_8, %c0_9, %c0_10] : memref<1x16x128xf32, #tpu.memory_space<vmem>>, vector<1x16x128xf32>
    %10 = vector.shape_cast %9 : vector<1x16x128xf32> to vector<16x128xf32>
    %c0_11 = arith.constant 0 : index
    %c0_12 = arith.constant 0 : index
    %11 = vector.load %arg3[%c0_11, %c0_12] : memref<128x128xf32, #tpu.memory_space<vmem>>, vector<128x128xf32>
    %cst = arith.constant dense<0.000000e+00> : vector<16x128xf32>
    %12 = tpu.matmul %10, %11, %cst {dimension_numbers = #tpu.dot_dimension_numbers<[1], [0], [0], [1], [0, 0, 1, 1], [], []>} : vector<16x128xf32>, vector<128x128xf32>, vector<16x128xf32> -> vector<16x128xf32>
    %13 = arith.addf %8, %12 : vector<16x128xf32>
    %c0_13 = arith.constant 0 : index
    %c0_14 = arith.constant 0 : index
    %14 = vector.load %arg9[%c0_13, %c0_14] : memref<16x128xf32, #tpu.memory_space<vmem>>, vector<16x128xf32>
    tpu.vector_store %arg9[%c0_13, %c0_14], %13 {strides = array<i32>} : memref<16x128xf32, #tpu.memory_space<vmem>>, vector<16x128xf32>,
    %c1_i32 = arith.constant 1 : i32
    %15 = arith.cmpi eq, %arg1, %c1_i32 : i32
    %16 = arith.extui %15 : i1 to i32
    %c0_i32_15 = arith.constant 0 : i32
    %17 = arith.cmpi ne, %16, %c0_i32_15 : i32
    scf.if %17 {
      %c0_16 = arith.constant 0 : index
      %c0_17 = arith.constant 0 : index
      %18 = vector.load %arg9[%c0_16, %c0_17] : memref<16x128xf32, #tpu.memory_space<vmem>>, vector<16x128xf32>
      %c0_18 = arith.constant 0 : index
      %c0_19 = arith.constant 0 : index
      %19 = vector.load %arg4[%c0_18, %c0_19] : memref<16x16xf32, #tpu.memory_space<vmem>>, vector<16x16xf32>
      %cst_20 = arith.constant dense<0.000000e+00> : vector<16x128xf32>
      %20 = tpu.matmul %19, %18, %cst_20 {dimension_numbers = #tpu.dot_dimension_numbers<[1], [0], [0], [1], [0, 0, 1, 1], [], []>} : vector<16x16xf32>, vector<16x128xf32>, vector<16x128xf32> -> vector<16x128xf32>
      %c0_21 = arith.constant 0 : index
      %c0_22 = arith.constant 0 : index
      %21 = vector.load %arg5[%c0_21, %c0_22] : memref<16x1xf32, #tpu.memory_space<vmem>>, vector<16x1xf32>
      %22 = vector.broadcast %21 : vector<16x1xf32> to vector<16x128xf32>
      %23 = arith.addf %20, %22 : vector<16x128xf32>
      %cst_23 = arith.constant 0.000000e+00 : f32
      %24 = vector.broadcast %cst_23 : f32 to vector<16x128xf32>
      %25 = arith.maximumf %23, %24 : vector<16x128xf32>
      %c0_24 = arith.constant 0 : index
      %c0_25 = arith.constant 0 : index
      %26 = vector.load %arg6[%c0_24, %c0_25] : memref<16x128xf32, #tpu.memory_space<vmem>>, vector<16x128xf32>
      %27 = arith.mulf %25, %26 : vector<16x128xf32>
      %c0_26 = arith.constant 0 : index
      %c0_27 = arith.constant 0 : index
      %c0_28 = arith.constant 0 : index
      %28 = vector.load %arg7[%c0_26, %c0_27, %c0_28] : memref<1x16x128xf32, #tpu.memory_space<vmem>>, vector<1x16x128xf32>
      %29 = vector.shape_cast %28 : vector<1x16x128xf32> to vector<16x128xf32>
      %30 = vector.shape_cast %27 : vector<16x128xf32> to vector<1x16x128xf32>
      tpu.vector_store %arg7[%c0_26, %c0_27, %c0_28], %30 {strides = array<i32>} : memref<1x16x128xf32, #tpu.memory_space<vmem>>, vector<1x16x128xf32>,
    } else {
    }
    return
  }
  func.func @transform_0(%arg0: i32, %arg1: i32) -> (i32, i32, i32) {
    %c0_i32 = arith.constant 0 : i32
    %c0_i32_0 = arith.constant 0 : i32
    return %arg0, %c0_i32, %arg1 : i32, i32, i32
  }
  func.func @transform_1(%arg0: i32, %arg1: i32) -> (i32, i32) {
    %c0_i32 = arith.constant 0 : i32
    %c0_i32_0 = arith.constant 0 : i32
    return %arg1, %c0_i32 : i32, i32
  }
  func.func @transform_2(%arg0: i32, %arg1: i32) -> (i32, i32) {
    %c0_i32 = arith.constant 0 : i32
    %c0_i32_0 = arith.constant 0 : i32
    %c0_i32_1 = arith.constant 0 : i32
    return %c0_i32, %c0_i32_0 : i32, i32
  }
  func.func @transform_3(%arg0: i32, %arg1: i32) -> (i32, i32) {
    %c0_i32 = arith.constant 0 : i32
    %c0_i32_0 = arith.constant 0 : i32
    %c0_i32_1 = arith.constant 0 : i32
    return %c0_i32, %c0_i32_0 : i32, i32
  }
  func.func @transform_4(%arg0: i32, %arg1: i32) -> (i32, i32) {
    %c0_i32 = arith.constant 0 : i32
    %c0_i32_0 = arith.constant 0 : i32
    %c0_i32_1 = arith.constant 0 : i32
    return %c0_i32, %c0_i32_0 : i32, i32
  }
  func.func @transform_5(%arg0: i32, %arg1: i32) -> (i32, i32, i32) {
    %c0_i32 = arith.constant 0 : i32
    %c0_i32_0 = arith.constant 0 : i32
    %c0_i32_1 = arith.constant 0 : i32
    return %arg0, %c0_i32, %c0_i32_0 : i32, i32, i32
  }
  func.func @transform_6(%arg0: i32, %arg1: i32) -> (i32, i32, i32) {
    %c0_i32 = arith.constant 0 : i32
    %c0_i32_0 = arith.constant 0 : i32
    return %arg0, %c0_i32, %arg1 : i32, i32, i32
  }
}

</mosaic_0001>

<bundles_post_ra>
// kernel: tpu_custom_call.1
= control target key start
LH: loop header
LB: loop body
LE: loop exit
PB: predicated region body
PF: predicated region fallthrough
CT: control target
= control target key end

     0   :  { %s1767_s0 = inlined_call_operand.hbm [shape: f32[2,16,256], index: 0, kind: input, shape index: {}]   ;;  %s1768_s1 = inlined_call_operand.hbm [shape: f32[256,128], index: 1, kind: input, shape index: {}]   ;;  %s1769_s2 = inlined_call_operand.vmem [shape: f32[16,16], index: 2, kind: input, shape index: {}]   ;;  %s1770_s3 = inlined_call_operand.vmem [shape: f32[16,1], index: 3, kind: input, shape index: {}]   ;;  %s1771_s4 = inlined_call_operand.vmem [shape: f32[16,128], index: 4, kind: input, shape index: {}]   ;;  %s1772_s5 = inlined_call_operand.hbm [shape: f32[2,16,128], index: 5, kind: output, shape index: {0}]   ;;  %s1773_s6 = inlined_call_operand.hbm [shape: f32[2,32,256], index: 6, kind: output, shape index: {1}]  }
   0x1   :  { %1796 = sst [smem:[#allocation24_spill]] %s1767_s0 }
   0x2   :  { %1797 = sst [smem:[#allocation25_spill]] %s1768_s1 }
   0x3   :  { %1798 = sst [smem:[#allocation26_spill]] %s1769_s2 }
   0x4   :  { %1799 = sst [smem:[#allocation27_spill]] %s1770_s3 }
   0x5   :  { %1800 = sst [smem:[#allocation28_spill]] %s1771_s4 }
   0x6   :  { %1801 = sst [smem:[#allocation29_spill]] %s1772_s5 }
   0x7   :  { %1802 = sst [smem:[#allocation30_spill]] %s1773_s6 }
   0x8   :  { %12 = vsyncpa [#allocation4], 0 }
   0x9   :  { %14 = vsyncpa [#allocation4 + $0x1], 0 }
   0xa   :  { %15 = vsyncpa [#allocation7], 0 }
   0xb   :  { %17 = vsyncpa [#allocation7 + $0x1], 0 }
   0xc   :  { %18 = vsyncpa [#allocation5], 0 }
   0xd   :  { %20 = vsyncpa [#allocation5 + $0x1], 0 }
   0xe   :  { %21 = vsyncpa [#allocation10], 0 }
   0xf   :  { %23 = vsyncpa [#allocation10 + $0x1], 0  ;;  %s1302_s21 = smov 0   ;;  %s1304_s22 = smov 0  }
  0x10   :  { %s1306_s23 = smov 0   ;;  %s1308_s24 = smov 0  }
  0x11   :  { %s1310_s25 = smov 0   ;;  %s1312_s26 = smov 0  }
  0x12   :  { %s1314_s27 = smov 0   ;;  %s1316_s28 = smov 0  }
  0x13   :  { %s1318_s29 = smov 0   ;;  %s1320_s30 = smov 0  }
  0x14   :  { %s1322_s7 = smov 0   ;;  %s1324_s8 = smov 0  }
  0x15   :  { %s1326_s9 = smov 0   ;;  %s1328_s10 = smov 0  }
  0x16 LB: > { %1803 = sst [smem:[#allocation15_spill]] %s1201_s21  ;;  %s1777_s11 = sadd.s32 4294967295, %s1253_s10   ;;  %s1253_s10 = sphi %s1328_s10, %s29_s10   ;;  %s1249_s9 = sphi %s1326_s9, %s1864_s9   ;;  %s1245_s8 = sphi %s1324_s8, %s1863_s8   ;;  %s1241_s7 = sphi %s1322_s7, %s1851_s7   ;;  %s1237_s30 = sphi %s1320_s30, %s1862_s30   ;;  %s1233_s29 = sphi %s1318_s29, %s1861_s29   ;;  %s1229_s28 = sphi %s1316_s28, %s1860_s28   ;;  %s1225_s27 = sphi %s1314_s27, %s1859_s27   ;;  %s1221_s26 = sphi %s1312_s26, %s1858_s26   ;;  %s1217_s25 = sphi %s1310_s25, %s1857_s25   ;;  %s1213_s24 = sphi %s1308_s24, %s1856_s24   ;;  %s1209_s23 = sphi %s1306_s23, %s1848_s23   ;;  %s1205_s22 = sphi %s1304_s22, %s1855_s22   ;;  %s1201_s21 = sphi %s1302_s21, %s1854_s21  }
  0x17   : > { %1804 = sst [smem:[#allocation16_spill]] %s1209_s23  ;;  %s738_s12 = sadd.s32 4294967294, %s1253_s10  }
  0x18   : > { %1805 = sst [smem:[#allocation17_spill]] %s1249_s9  ;;  %s38_s13 = sadd.s32 1, %s1245_s8 }
  0x19   : > { %s41_s14 = sadd.s32 1, %s1249_s9  ;;  %p39_p0 = scmp.ge.s32.totalorder %s38_s13, 2 }
  0x1a   : > { %s50_s15 = sadd.s32 1, %s1233_s29  ;;  %p57_p1 = scmp.ne.s32.totalorder %s1233_s29, %s1229_s28 }
  0x1b   : > { %p1778_p2 = scmp.eq.s32.totalorder %s1253_s10, 0  ;;  %s1866_s13 = smov (%p39_p0, %s38_s13), 0 }
  0x1c   : > { %1806 = sst [smem:[#allocation18_spill]] %s1866_s13  ;;  %s1868_s14 = smov (!%p39_p0, %s41_s14), %s1249_s9 }
  0x1d   : > { %s1385_s16 = ssub.s32 %s1245_s8, %s1866_s13  ;;  %p1392_p3 = por %p1778_p2, %p57_p1 }
  0x1e   : > { %p43_p4 = scmp.ge.s32.totalorder %s1868_s14, 2  ;;  %p1788_p5 = scmp.ne.s32.totalorder %s1229_s28, %s1225_s27 }
  0x1f   : > { %s165_s18 = sadd.s32 1, %s1209_s23  ;;  %p175_p7 = scmp.ne.s32.totalorder %s1209_s23, %s1205_s22 }
  0x20   : > { %s1870_s14 = smov (%p43_p4, %s1868_s14), 0  ;;  %p176_p8 = scmp.eq.s32.totalorder %s1777_s11, 3 }
  0x21   : > { %1808 = sst [smem:[#allocation19_spill]] %s1870_s14  ;;  %s45_s19 = ssub.s32 %s1249_s9, %s1870_s14 }
  0x22   : > { %p181_p9 = scmp.ne.s32.totalorder %s1205_s22, %s1201_s21  ;;  %s47_s20 = sor.u32 %s1385_s16, %s45_s19 }
  0x23   : > { %p163_p10 = scmp.eq.s32.totalorder %s45_s19, 0  ;;  %p48_p11 = scmp.eq.s32.totalorder %s47_s20, 0 }
  0x24   : > { %p1411_p12 = por %p176_p8, %p175_p7  ;;  %p182_p13 = scmp.eq.s32.totalorder %s738_s12, 3 }
  0x25   : > { %s1416_s6 = scalar_select %p163_p10, %s1209_s23, %s165_s18  }
  0x26   : > { %s1809_s13 = scalar_select %p1411_p12, 1, 0 }
  0x27   : > { %1811 = sst [smem:[#allocation21_spill]] %s1416_s6  ;;  %p1424_p0 = por %p176_p8, %p57_p1 }
  0x28   : > { %1810 = sst [smem:[#allocation20_spill]] %s1809_s13  ;;  %p1787_p4 = scmp.lt.s32.totalorder %s1253_s10, 4 }
  0x29   : > { %s1419_s5 = scalar_select %p48_p11, %s1233_s29, %s50_s15  }
  0x2a   : > { %s1813_s11 = scalar_select %p1424_p0, 1, 0 }
  0x2b   : > { %1812 = sst [smem:[#allocation22_spill]] %s1419_s5  ;;  %p1429_p2 = por %p182_p13, %p181_p9 }
  0x2c   : > { %1814 = sst [smem:[#allocation23_spill]] %s1813_s11  ;;  %p1436_p7 = por %p182_p13, %p1788_p5 }
  0x2d   : > { %s1815_s19 = scalar_select %p1429_p2, 1, 0 }
  0x2e   : > { %s1816_s18 = scalar_select %p1436_p7, 1, 0 }
  0x2f   : > { %s239_s20 = sand.u32 1, %s1233_s29   ;;  %s742_s15 = sshll.u32 %s1249_s9, 2 }
  0x30   : > { %s741_s14 = sshll.u32 %s239_s20, 4  ;;  %s248_s5 = sadd.s32 %s1245_s8, %s742_s15 }
  0x31   : > { %s743_s12 = sshll.u32 %s248_s5, 7  ;;  %s243_s6 = scalar_lea.vmem [#allocation3], %s741_s14 }
  0x32   : > { %s251_s23 = sshll.u32 %s243_s6, 4  ;;  %s1817_s0 = sld [smem:[#allocation24_spill]]  ;;  %s1448_s23 = int_to_ptr.vmem [resolvable:$true] %s251_s23 }
  0x33   : > { %p1454_p1 = pnand %p1787_p4, %p1392_p3  ;;  %s1459_s5 = scalar_lea.sflag [#allocation4], %s239_s20 }
  0x35   : > { %p1013_p10 = pneg %p1454_p1 }
  0x38   : > { %s1446_s11 = scalar_lea.hbm %s1817_s0, %s743_s12  ;;  %s1016_s14 = scalar_lea.hbm %s1817_s0, 1024 }
  0x39   : > { %s1011_s6 = scalar_lea.hbm %s1446_s11, 256  ;;  %p1017_p3 = scmp.lt.u32.totalorder %s1446_s11, %s1817_s0 }
  0x3a   : > { %p1012_p9 = scmp.ne.s32.totalorder %s1446_s11, %s1011_s6  ;;  %p1018_p4 = scmp.lt.u32.totalorder %s1016_s14, %s1011_s6 }
  0x3b   : > { %p1020_p6 = scmp.lt.u32.totalorder %s1011_s6, %s1446_s11 }
  0x3c   : > { %p1014_p11 = pnand %p1013_p10, %p1012_p9  ;;  %p1019_p5 = por %p1018_p4, %p1017_p3 }
  0x3e   : > { %p1015_p13 = pneg %p1014_p11  ;;  %p1021_p8 = por %p1020_p6, %p1019_p5 }
  0x40   : > { %p1022_p7 = pnand %p1021_p8, %p1015_p13 }
  0x42   : > { %1025 = shalt.err (!%p1022_p7)
}
  0x43   : > { %s1026_s20 = scalar_lea.vmem %s1448_s23, 256  ;;  %s1255_s12 = smov [#allocation3]  }
  0x44   : > { %p1027_p9 = scmp.ne.s32.totalorder %s1448_s23, %s1026_s20  ;;  %s1031_s21 = sshll.u32 %s1255_s12, 4  ;;  %s1032_s21 = int_to_ptr.vmem [resolvable:$false] %s1031_s21 }
  0x45   : > { %s1033_s13 = scalar_lea.vmem %s1032_s21, 512  ;;  %p1034_p0 = scmp.lt.s32.totalorder %s1448_s23, %s1032_s21 }
  0x46   : > { %p1029_p11 = pnand %p1027_p9, %p1013_p10  ;;  %p1035_p4 = scmp.lt.s32.totalorder %s1033_s13, %s1026_s20 }
  0x48   : > { %p1030_p2 = pneg %p1029_p11  ;;  %p1036_p3 = por %p1035_p4, %p1034_p0 }
  0x4a   : > { %p1037_p5 = pnand %p1036_p3, %p1030_p2 }
  0x4c   : > { %1040 = shalt.err (!%p1037_p5)
}
  0x4d   : > { %s1256_s6 = smov 256   ;;  %s1790_s14 = smov 128  }
  0x4e   : > { %s1791_s17 = smov 8   ;;  %p280_p2 = scmp.lt.s32.totalorder %s1253_s10, 5 }
  0x4f   : > { %877 = dma.hbm_to_vmem [thread:$0]  (!%p1454_p1), %s1446_s11, 256, %s1448_s23, %s1459_s5, %s1256_s6, %s1790_s14, %s1791_s17  }
  0x50   : > { %p1819_p6 = scmp.ge.s32.totalorder %s1253_s10, 1  ;;  %s1821_s20 = sadd.s32 4294967295, %s1253_s10  }
  0x51   : > { %p64_p7 = scmp.eq.s32.totalorder %s1821_s20, 0  ;;  %s76_s12 = sadd.s32 1, %s1221_s26 }
  0x52   : > { %p1492_p0 = pnand %p1819_p6, %p280_p2  ;;  %p1822_p8 = scmp.eq.s32.totalorder %s1385_s16, 0 }
  0x53   : > { %p1823_p10 = scmp.ne.s32.totalorder %s1229_s28, %s1225_s27  ;;  %p83_p9 = scmp.ne.s32.totalorder %s1221_s26, %s1217_s25 }
  0x54   : > { %s1502_s21 = scalar_select %p1822_p8, %s1221_s26, %s76_s12  }
  0x55   : > { %p1507_p13 = por %p64_p7, %p1823_p10  ;;  %p89_p1 = scmp.ne.s32.totalorder %s1217_s25, %s1213_s24 }
  0x56   : > { %s261_s23 = sand.u32 1, %s1221_s26   ;;  %p1825_p11 = scmp.eq.s32.totalorder %s1253_s10, 0 }
  0x57   : > { %s1824_s13 = scalar_select %p1507_p13, 1, 0 }
  0x58   : > { %p85_p4 = por %p83_p9, %p1825_p11  ;;  %p1518_p3 = por %p89_p1, %p64_p7 }
  0x59   : > { %s744_s11 = sshll.u32 %s261_s23, 7  ;;  %s764_s5 = sshll.u32 %s1245_s8, 11 }
  0x5a   : > { %s1826_s9 = scalar_select %p1518_p3, 1, 0 }
  0x5b   : > { %s1827_s1 = sld [smem:[#allocation25_spill]]  ;;  %s265_s12 = scalar_lea.vmem [#allocation6], %s744_s11 }
  0x5c   : > { %s272_s24 = sshll.u32 %s265_s12, 4  ;;  %p1828_p5 = scmp.lt.s32.totalorder %s1253_s10, 4  ;;  %s1528_s24 = int_to_ptr.vmem [resolvable:$true] %s272_s24 }
  0x5d   : > { %s1536_s17 = scalar_lea.sflag [#allocation7], %s261_s23 }
  0x5e   : > { %p1532_p2 = pnand %p1828_p5, %p85_p4 }
  0x60   : > { %p1043_p7 = pneg %p1532_p2 }
  0x61   : > { %s1526_s20 = scalar_lea.hbm %s1827_s1, %s764_s5  ;;  %s1046_s16 = scalar_lea.hbm %s1827_s1, 4096 }
  0x62   : > { %s1041_s6 = scalar_lea.hbm %s1526_s20, 2048  ;;  %p1047_p9 = scmp.lt.u32.totalorder %s1526_s20, %s1827_s1 }
  0x63   : > { %p1042_p6 = scmp.ne.s32.totalorder %s1526_s20, %s1041_s6  ;;  %p1048_p1 = scmp.lt.u32.totalorder %s1046_s16, %s1041_s6 }
  0x64   : > { %p1050_p4 = scmp.lt.u32.totalorder %s1041_s6, %s1526_s20 }
  0x65   : > { %p1044_p8 = pnand %p1043_p7, %p1042_p6  ;;  %p1049_p11 = por %p1048_p1, %p1047_p9 }
  0x67   : > { %p1045_p10 = pneg %p1044_p8  ;;  %p1051_p5 = por %p1050_p4, %p1049_p11 }
  0x69   : > { %p1052_p12 = pnand %p1051_p5, %p1045_p10 }
  0x6b   : > { %1055 = shalt.err (!%p1052_p12)
}
  0x6c   : > { %s1056_s23 = scalar_lea.vmem %s1528_s24, 2048  ;;  %s1259_s11 = smov [#allocation6]  }
  0x6d   : > { %p1057_p6 = scmp.ne.s32.totalorder %s1528_s24, %s1056_s23  ;;  %s1061_s5 = sshll.u32 %s1259_s11, 4  ;;  %s1062_s5 = int_to_ptr.vmem [resolvable:$false] %s1061_s5 }
  0x6e   : > { %s1063_s0 = scalar_lea.vmem %s1062_s5, 4096  ;;  %p1064_p13 = scmp.lt.s32.totalorder %s1528_s24, %s1062_s5 }
  0x6f   : > { %p1059_p8 = pnand %p1057_p6, %p1043_p7  ;;  %p1065_p9 = scmp.lt.s32.totalorder %s1063_s0, %s1056_s23 }
  0x71   : > { %p1060_p3 = pneg %p1059_p8  ;;  %p1066_p1 = por %p1065_p9, %p1064_p13 }
  0x73   : > { %p1067_p11 = pnand %p1066_p1, %p1060_p3 }
  0x75   : > { %1070 = shalt.err (!%p1067_p11)
}
  0x76   : > { %s1830_s6 = smov 8   ;;  %s1831_s16 = smov 128  }
  0x77   : > { %880 = dma.hbm_to_vmem [thread:$0]  (!%p1532_p2), %s1526_s20, 2048, %s1528_s24, %s1536_s17, %s1831_s16, %s1831_s16, %s1830_s6  }
  0x78   : > { %284 = sbr.rel (%p1492_p0) target bundleno = 683 (0x2ab), region = 40  ;;  %s1570_s12 = sand.u32 (!%p1492_p0), 1, %s1229_s28  }
  0x79   : > { %s748_s23 = sshll.u32 (!%p1492_p0), %s1570_s12, 4  ;;  %s287_s11 = scalar_lea.sflag (!%p1492_p0), [#allocation4], %s1570_s12 }
  0x7a   : > { %s1574_s5 = scalar_lea.vmem (!%p1492_p0), [#allocation3], %s748_s23  ;;  %p1832_p12 = scmp.ne.s32.totalorder (!%p1492_p0), %s1824_s13, 0 }
  0x7f   : > { %1184 = dma.done.wait (%p1832_p12), %s287_s11, 256  }
  0x80   : > { %1186 = vsyncadd (%p1832_p12), %s287_s11, 4294967040  ;;  %s295_s14 = sand.u32 1, %s1217_s25   ;;  %p1833_p0 = scmp.ne.s32.totalorder %s1826_s9, 0 }
  0x81   : > { %s749_s17 = sshll.u32 %s295_s14, 7  ;;  %s296_s15 = scalar_lea.sflag [#allocation7], %s295_s14 }
  0x82   : > { %s1581_s20 = scalar_lea.vmem [#allocation6], %s749_s17 }
  0x83   : > { %1188 = dma.done.wait (%p1833_p0), %s296_s15, 2048  }
  0x84   : > { %1190 = vsyncadd (%p1833_p0), %s296_s15, 4294965248  ;;  %s328_s24 = sand.u32 1, %s1205_s22   ;;  %v339_v0 = vld [vmem:[%s1574_s5] sm:$0xff]  ;;  %v340_v1 = vld [vmem:[%s1574_s5 + $0x8] sm:$0xff]  ;;  %s1592_s0 = scalar_lea.vmem [#allocation9], %s748_s23 }
  0x85   : > { %s750_s13 = sshll.u32 %s328_s24, 4  ;;  %341 = vst [vmem:[%s1592_s0] sm:$0xff] %v339_v0  ;;  %342 = vst [vmem:[%s1592_s0 + $0x8] sm:$0xff] %v340_v1  ;;  %p752_p13 = scmp.ne.s32.totalorder %s1237_s30, 0 }
  0x86   : > { %s1596_s6 = scalar_lea.vmem [#allocation8], %s750_s13  ;;  %v1260_v2 = vmov (!%p752_p13), 0.0  }
  0x87   : > { %346 = sbr.rel (%p752_p13) target bundleno = 142 (0x8e), region = 52  ;;  %347 = vst [vmem:[#allocation2] sm:$0xff] (!%p752_p13), %v1260_v2  ;;  %348 = vst [vmem:[#allocation2 + $0x8] sm:$0xff] (!%p752_p13), %v1260_v2 }
  0x8e PF: > { %v353_v3 = vld [vmem:[%s1581_s20] sm:$0xff]  ;;  %v354_v4 = vld [vmem:[%s1581_s20 + $0x8] sm:$0xff]  ;;  %v355_v5 = vld [vmem:[%s1581_s20 + $0x10] sm:$0xff]  ;;  %p753_p3 = scmp.ne.s32.totalorder %s1237_s30, 1 }
  0x8f   : > { %v830_v6 = vpack.c.bf16 %v354_v4, %v353_v3  ;;  %v356_v7 = vld [vmem:[%s1581_s20 + $0x18] sm:$0xff]  ;;  %v357_v9 = vld [vmem:[%s1581_s20 + $0x20] sm:$0xff]  ;;  %v358_v10 = vld [vmem:[%s1581_s20 + $0x28] sm:$0xff]  ;;  %s1834_s2 = sld [smem:[#allocation26_spill]] (!%p753_p3)  ;;  %vm468_vm0 = vcmask (!%p753_p3), 130048   ;;  %v1261_v39 = vmov (!%p753_p3), 0  }
  0x90   : > { %v834_v8 = vpack.c.bf16 %v356_v7, %v355_v5  ;;  %v838_v11 = vpack.c.bf16 %v358_v10, %v357_v9  ;;  %v351_v12 = vld [vmem:[%s1574_s5] sm:$0xff]  ;;  %v360_v14 = vld [vmem:[%s1581_s20 + $0x38] sm:$0xff]  ;;  %v362_v17 = vld [vmem:[%s1581_s20 + $0x48] sm:$0xff]  ;;  %1010 = vset.pattern.permute.xlu0 (!%p753_p3), %v1261_v39  ;;  %s1835_s3 = sld [smem:[#allocation27_spill]] (!%p753_p3)  ;;  %s1836_s4 = sld [smem:[#allocation28_spill]] (!%p753_p3) }
  0x91   : > { %831 = vmatprep.subr.bf16.mxu0 %v830_v6  ;;  %v359_v13 = vld [vmem:[%s1581_s20 + $0x30] sm:$0xff]  ;;  %820 = vmatprep.mubr.f32.mxu0 %v351_v12  ;;  %v361_v16 = vld [vmem:[%s1581_s20 + $0x40] sm:$0xff]  ;;  %v364_v20 = vld [vmem:[%s1581_s20 + $0x58] sm:$0xff] }
  0x92   : > { %833 = vmatpush3.bf16.msra.mxu0 %v830_v6  ;;  %v842_v15 = vpack.c.bf16 %v360_v14, %v359_v13  ;;  %v846_v18 = vpack.c.bf16 %v362_v17, %v361_v16  ;;  %v363_v19 = vld [vmem:[%s1581_s20 + $0x50] sm:$0xff]  ;;  %v365_v22 = vld [vmem:[%s1581_s20 + $0x60] sm:$0xff]  ;;  %v366_v23 = vld [vmem:[%s1581_s20 + $0x68] sm:$0xff] }
  0x93   : > { %835 = vmatprep.subr.bf16.mxu0 %v834_v8  ;;  %v850_v21 = vpack.c.bf16 %v364_v20, %v363_v19  ;;  %v854_v24 = vpack.c.bf16 %v366_v23, %v365_v22  ;;  %v367_v25 = vld [vmem:[%s1581_s20 + $0x70] sm:$0xff]  ;;  %v368_v26 = vld [vmem:[%s1581_s20 + $0x78] sm:$0xff] }
  0x94   : > { %v858_v27 = vpack.c.bf16 %v368_v26, %v367_v25  ;;  %v352_v28 = vld [vmem:[%s1574_s5 + $0x8] sm:$0xff]  ;;  %v349_v30 = vld [vmem:[#allocation2] sm:$0xff] }
  0x95   : > { %v350_v29 = vld [vmem:[#allocation2 + $0x8] sm:$0xff]  ;;  %v454_v37 = vld [vmem:[%s1834_s2] sm:$0xff] (!%p753_p3) }
  0x96   : > { %837 = vmatpush3.bf16.msra.mxu0 %v834_v8  ;;  %v456_v40 = vld [vmem:[%s1835_s3] sm:$0xff] (!%p753_p3)  ;;  %v457_v41 = vld [vmem:[%s1835_s3 + $0x8] sm:$0xff] (!%p753_p3) }
  0x97   : > { %839 = vmatprep.subr.bf16.mxu0 %v838_v11  ;;  %460 = vperm.xlu0 (!%p753_p3), %1010, %v456_v40   ;;  %v455_v42 = vld [vmem:[%s1834_s2 + $0x8] sm:$0xff] (!%p753_p3)  ;;  %v552_v51 = vld [vmem:[%s1836_s4] sm:$0xff] (!%p753_p3) }
  0x98   : > { %v553_v48 = vld [vmem:[%s1836_s4 + $0x8] sm:$0xff] (!%p753_p3) }
  0x9a   : > { %841 = vmatpush3.bf16.msra.mxu0 %v838_v11 }
  0x9b   : > { %843 = vmatprep.subr.bf16.mxu0 %v842_v15  ;;  %465 = vperm.xlu0 (!%p753_p3), %1010, %v457_v41  }
  0x9e   : > { %845 = vmatpush3.bf16.msra.mxu0 %v842_v15 }
  0x9f   : > { %847 = vmatprep.subr.bf16.mxu0 %v846_v18 }
  0xa2   : > { %849 = vmatpush3.bf16.msra.mxu0 %v846_v18 }
  0xa3   : > { %851 = vmatprep.subr.bf16.mxu0 %v850_v21 }
  0xa6   : > { %853 = vmatpush3.bf16.msra.mxu0 %v850_v21 }
  0xa7   : > { %855 = vmatprep.subr.bf16.mxu0 %v854_v24 }
  0xaa   : > { %857 = vmatpush3.bf16.msra.mxu0 %v854_v24 }
  0xab   : > { %859 = vmatprep.subr.bf16.mxu0 %v858_v27 }
  0xae   : > { %861 = vmatpush3.bf16.msra.mxu0 %v858_v27 }
  0xb1   : > { %821 = vmatmul.mubr.f32.vlgmr.msra.gmra.mrb[0].mxu0 %v352_v28 }
  0xb2   : > { %827 = vmatprep.mubr.msk.f32.mxu0 (!%p753_p3), %vm468_vm0, %v454_v37 }
 0x116   : > { %v461_v43 = vpop.permute.xlu0 (!%p753_p3), %460 }
 0x11a   : > { %v466_v44 = vpop.permute.xlu0 (!%p753_p3), %465 }
 0x182   : > { %451 = sbr.rel (%p753_p3) target bundleno = 626 (0x272), region = 56 }
 0x184   : > { %v822_v31 = vpop.f32.mrb[0].mxu0 }
 0x185   : > { %v445_v32 = vadd.f32 %v822_v31, %v350_v29  ;;  %v435_v33 = vpop.f32.mrb[1].mxu0 }
 0x186   : > { %v444_v34 = vadd.f32 %v435_v33, %v349_v30 }
 0x187   : > { %447 = vst [vmem:[#allocation2 + $0x8] sm:$0xff] %v445_v32 }
 0x188   : > { %446 = vst [vmem:[#allocation2] sm:$0xff] %v444_v34 }
 0x18e   : > { %v453_v36 = vld [vmem:[#allocation2 + $0x8] sm:$0xff] }
 0x18f   : > { %v452_v35 = vld [vmem:[#allocation2] sm:$0xff] }
 0x190   : > { %v862_v38 = vpack.c.bf16 %v453_v36, %v452_v35 }
 0x192   : > { %863 = vmatprep.subr.bf16.mxu0 %v862_v38 }
 0x193   : > { %865 = vmatpush3.bf16.msra.mxu0 %v862_v38 }
 0x196   : > { %828 = vmatmul.mubr.msk.f32.vlgmr.msra.gmra.mrb[0].mxu0 %vm468_vm0, %v455_v42 }
 0x269   : > { %v829_v45 = vpop.f32.mrb[0].mxu0 }
 0x26a   : > { %v547_v46 = vadd.f32 %v829_v45, %v466_v44  ;;  %v541_v47 = vpop.f32.mrb[1].mxu0 }
 0x26b   : > { %v542_v49 = vadd.f32 %v541_v47, %v461_v43 }
 0x26c   : > { %v551_v50 = vmax.f32 %v547_v46, 0.0 }
 0x26d   : > { %v550_v52 = vmax.f32 %v542_v49, 0.0 }
 0x26e   : > { %v555_v53 = vmul.f32 %v553_v48, %v551_v50 }
 0x26f   : > { %v554_v54 = vmul.f32 %v552_v51, %v550_v52 }
 0x270   : > { %557 = vst [vmem:[%s1596_s6 + $0x8] sm:$0xff] %v555_v53 }
 0x271   : > { %556 = vst [vmem:[%s1596_s6] sm:$0xff] %v554_v54 }
 0x272 PF: > { %s1837_s23 = sld [smem:[#allocation20_spill]]  ;;  %s765_s11 = sshll.u32 %s1241_s7, 8 }
 0x273   : > { %s1838_s17 = sld [smem:[#allocation29_spill]]  ;;  %s577_s20 = sshll.u32 %s1596_s6, 4  ;;  %s1645_s20 = int_to_ptr.vmem [resolvable:$true] %s577_s20 }
 0x274   : > { %s1649_s13 = scalar_lea.sflag [#allocation5], %s328_s24  ;;  %s1071_s9 = scalar_lea.vmem %s1645_s20, 256 }
 0x275   : > { %p1072_p2 = scmp.ne.s32.totalorder %s1645_s20, %s1071_s9  ;;  %s1262_s16 = smov [#allocation8]  }
 0x276   : > { %s1075_s1 = sshll.u32 %s1262_s16, 4  ;;  %s1076_s1 = int_to_ptr.vmem [resolvable:$false] %s1075_s1 }
 0x277   : > { %s1077_s5 = scalar_lea.vmem %s1076_s1, 512  ;;  %p1078_p5 = scmp.lt.s32.totalorder %s1645_s20, %s1076_s1 }
 0x278   : > { %p1839_p7 = scmp.ne.s32.totalorder %s1837_s23, 0  ;;  %p1079_p6 = scmp.lt.s32.totalorder %s1077_s5, %s1071_s9 }
 0x279   : > { %s1642_s15 = scalar_lea.hbm %s1838_s17, %s765_s11 }
 0x27a   : > { %p1073_p10 = pnand %p1072_p2, %p1839_p7  ;;  %p1080_p8 = por %p1079_p6, %p1078_p5 }
 0x27c   : > { %p1074_p4 = pneg %p1073_p10 }
 0x27e   : > { %p1081_p9 = pnand %p1080_p8, %p1074_p4 }
 0x280   : > { %1084 = shalt.err (!%p1081_p9)
}
 0x281   : > { %s1085_s24 = scalar_lea.hbm %s1642_s15, 256  ;;  %s1089_s14 = scalar_lea.hbm %s1838_s17, 512 }
 0x282   : > { %p1086_p1 = scmp.ne.s32.totalorder %s1642_s15, %s1085_s24  ;;  %p1090_p0 = scmp.lt.u32.totalorder %s1642_s15, %s1838_s17 }
 0x283   : > { %p1091_p13 = scmp.lt.u32.totalorder %s1089_s14, %s1085_s24  ;;  %p1093_p2 = scmp.lt.u32.totalorder %s1085_s24, %s1642_s15 }
 0x284   : > { %p1087_p11 = pnand %p1086_p1, %p1839_p7 }
 0x285   : > { %p1092_p3 = por %p1091_p13, %p1090_p0 }
 0x286   : > { %p1088_p12 = pneg %p1087_p11 }
 0x287   : > { %p1094_p10 = por %p1093_p2, %p1092_p3 }
 0x289   : > { %p1095_p4 = pnand %p1094_p10, %p1088_p12 }
 0x28b   : > { %1098 = shalt.err (!%p1095_p4)
}
 0x28c   : > { %s1263_s9 = smov 128   ;;  %s1840_s5 = sld [smem:[#allocation23_spill]] }
 0x28d   : > { %s1264_s6 = smov 8   ;;  %s760_s24 = sshll.u32 %s1241_s7, 3 }
 0x28e   : > { %870 = dma.vmem_to_hbm [thread:$0]  (%p1839_p7), %s1645_s20, 256, %s1642_s15, %s1649_s13, %s1263_s9, %s1263_s9, %s1264_s6  }
 0x28f   : > { %s594_s11 = sshll.u32 %s1592_s0, 4  ;;  %s591_s14 = sadd.s32 %s1237_s30, %s760_s24  ;;  %s1679_s11 = int_to_ptr.vmem [resolvable:$true] %s594_s11 }
 0x290   : > { %s761_s16 = sshll.u32 %s591_s14, 7  ;;  %s1841_s3 = sld [smem:[#allocation30_spill]] }
 0x291   : > { %s564_s17 = scalar_lea.sflag [#allocation10], %s1570_s12  ;;  %s1099_s23 = scalar_lea.vmem %s1679_s11, 256 }
 0x292   : > { %p1100_p5 = scmp.ne.s32.totalorder %s1679_s11, %s1099_s23  ;;  %p1842_p6 = scmp.ne.s32.totalorder %s1840_s5, 0 }
 0x293   : > { %s1265_s7 = smov [#allocation9]  }
 0x294   : > { %p1101_p8 = pnand %p1100_p5, %p1842_p6  ;;  %s1103_s0 = sshll.u32 %s1265_s7, 4  ;;  %s1104_s0 = int_to_ptr.vmem [resolvable:$false] %s1103_s0 }
 0x295   : > { %s1105_s30 = scalar_lea.vmem %s1104_s0, 512  ;;  %p1106_p9 = scmp.lt.s32.totalorder %s1679_s11, %s1104_s0 }
 0x296   : > { %s1684_s4 = scalar_lea.hbm %s1841_s3, %s761_s16  ;;  %p1102_p7 = pneg %p1101_p8 }
 0x297   : > { %p1107_p1 = scmp.lt.s32.totalorder %s1105_s30, %s1099_s23 }
 0x299   : > { %p1108_p11 = por %p1107_p1, %p1106_p9 }
 0x29b   : > { %p1109_p12 = pnand %p1108_p11, %p1102_p7 }
 0x29d   : > { %1112 = shalt.err (!%p1109_p12)
}
 0x29e   : > { %s1113_s2 = scalar_lea.hbm %s1684_s4, 256  ;;  %s1117_s13 = scalar_lea.hbm %s1841_s3, 2048 }
 0x29f   : > { %p1114_p0 = scmp.ne.s32.totalorder %s1684_s4, %s1113_s2  ;;  %p1118_p2 = scmp.lt.u32.totalorder %s1684_s4, %s1841_s3 }
 0x2a0   : > { %p1119_p10 = scmp.lt.u32.totalorder %s1117_s13, %s1113_s2  ;;  %p1121_p5 = scmp.lt.u32.totalorder %s1113_s2, %s1684_s4 }
 0x2a1   : > { %p1115_p13 = pnand %p1114_p0, %p1842_p6 }
 0x2a2   : > { %p1120_p4 = por %p1119_p10, %p1118_p2 }
 0x2a3   : > { %p1116_p3 = pneg %p1115_p13 }
 0x2a4   : > { %p1122_p8 = por %p1121_p5, %p1120_p4 }
 0x2a6   : > { %p1123_p7 = pnand %p1122_p8, %p1116_p3 }
 0x2a8   : > { %1126 = shalt.err (!%p1123_p7)
}
 0x2a9   : > { %s1266_s16 = smov 256  }
 0x2aa   : > { %871 = dma.vmem_to_hbm [thread:$0]  (%p1842_p6), %s1679_s11, 256, %s1684_s4, %s564_s17, %s1263_s9, %s1266_s16, %s1264_s6  }
 0x2ab PF: > { %s1843_s1 = sld [smem:[#allocation15_spill]]  ;;  %p889_p9 = scmp.ge.s32.totalorder %s1253_s10, 2 }
 0x2ac   : > { %p1844_p1 = scmp.ne.s32.totalorder %s1815_s19, 0 }
 0x2ae   : > { %p882_p11 = pnand %p889_p9, %p1844_p1 }
 0x2b1   : > { %s609_s23 = sand.u32 1, %s1843_s1  }
 0x2b2   : > { %s610_s7 = scalar_lea.sflag [#allocation5], %s609_s23 }
 0x2b3   : > { %1192 = dma.done.wait (!%p882_p11), %s610_s7, 256  }
 0x2b4   : > { %1194 = vsyncadd (!%p882_p11), %s610_s7, 4294967040  ;;  %s618_s5 = sand.u32 1, %s1225_s27   ;;  %p1845_p12 = scmp.ne.s32.totalorder %s1816_s18, 0 }
 0x2b5   : > { %s619_s12 = scalar_lea.sflag [#allocation10], %s618_s5 }
 0x2b6   : > { %p885_p0 = pnand %p889_p9, %p1845_p12 }
 0x2b8   : > { %1196 = dma.done.wait (!%p885_p0), %s619_s12, 256  }
 0x2b9   : > { %1198 = vsyncadd (!%p885_p0), %s619_s12, 4294967040  ;;  %s29_s10 = sadd.s32 1, %s1253_s10   ;;  %s1847_s19 = sld [smem:[#allocation16_spill]] }
 0x2ba   : > { %p1720_p6 = scmp.ge.s32.totalorder %s29_s10, 6   ;;  %s1848_s23 = sld [smem:[#allocation21_spill]] }
 0x2bb   : > { %s1849_s17 = smov %s1502_s21  ;;  %s1850_s9 = sld [smem:[#allocation22_spill]] }
 0x2bc   : > { %s1851_s7 = sld [smem:[#allocation17_spill]]  ;;  %s1852_s18 = sld [smem:[#allocation18_spill]] }
 0x2bd   : > { %s1853_s6 = sld [smem:[#allocation19_spill]]  ;;  %s1854_s21 = smov %s1205_s22 }
 0x2be   : > { %s1856_s24 = smov %s1217_s25  ;;  %s1857_s25 = smov %s1221_s26 }
 0x2bf   : > { %s1855_s22 = smov %s1847_s19  ;;  %s1858_s26 = smov %s1849_s17 }
 0x2c0   : > { %s1859_s27 = smov %s1229_s28  ;;  %s1860_s28 = smov %s1233_s29 }
 0x2c1   : > { %s1861_s29 = smov %s1850_s9  ;;  %s1862_s30 = smov %s1245_s8 }
 0x2c2   : > { %s1863_s8 = smov %s1852_s18  ;;  %28 = sbr.rel (!%p1720_p6) target bundleno = 22 (0x16), region = 123 }
 0x2c3   : > { %s1864_s9 = smov %s1853_s6 }
 0x2c9   :  { %624 = vsyncpa [#allocation4], 1 }
 0x2ca   :  { %626 = vsyncpa [#allocation4 + $0x1], 1 }
 0x2cb   :  { %627 = vsyncpa [#allocation7], 1 }
 0x2cc   :  { %629 = vsyncpa [#allocation7 + $0x1], 1 }
 0x2cd   :  { %630 = vsyncpa [#allocation5], 1 }
 0x2ce   :  { %632 = vsyncpa [#allocation5 + $0x1], 1 }
 0x2cf   :  { %633 = vsyncpa [#allocation10], 1 }
 0x2d0   :  { %635 = vsyncpa [#allocation10 + $0x1], 1 }

</bundles_post_ra>
